<compile_context>
chip_gen: v6e
topology: v6e:2x2x1
jax: 0.10.0
libtpu: 0.0.40
codegen_flags: <defaults>
</compile_context>

<pallas_src>
import functools
import math

import jax
import jax.numpy as jnp
from jax.experimental import pallas as pl
from jax.experimental.pallas import tpu as pltpu


def _round_up(x, m):
    return ((x + m - 1) // m) * m


def _cdiv(a, b):
    return -(-a // b)


def _pick_tile_b(batch, align, cap=8192):
    """Batch tile (samples): multiple of `align`; >=2 grid steps when the batch
    allows it (v7x megacore); capped so VMEM stays far below v5e's default."""
    cap = max((cap // align) * align, align)
    if batch <= align:
        return align
    n_tiles = max(2, _cdiv(batch, cap))
    return min(_round_up(_cdiv(batch, n_tiles), align), cap)


def _make_decoder_kernel(n_layers):
    def kernel(*refs):
        xg_ref = refs[0]
        out_ref = refs[-1]
        wb_refs = refs[1:-1]
        h = xg_ref[...]                                  # (pack*latent, TBG), batch on lanes
        for li in range(n_layers):
            w = wb_refs[2 * li][...]
            b = wb_refs[2 * li + 1][...]                 # (pack*out_i, 1) -> lane broadcast
            h = jnp.dot(w, h, preferred_element_type=jnp.float32) + b
            if li < n_layers - 1:
                h = jnp.maximum(h, 0.0)
        # h: (pack*out_dim, TBG).  Single XLU transpose -> batch-major packed tile with a
        # 128-multiple lane width => unmasked vector stores; host un-pack is a free reshape.
        out_ref[...] = jnp.transpose(h).astype(out_ref.dtype)

    return kernel


@functools.partial(jax.jit, static_argnames=("tile_b",))
def decoder_forward(z, params, tile_b=None):
    """z: (batch, latent_dim) float32.
    params: [(w, b), ...] with w: (out, in) (PyTorch layout), b: (out,).
    Returns (batch, out_dim), matching Decoder.forward."""
    batch, latent_dim = z.shape
    n_layers = len(params)
    out_dim = params[-1][0].shape[0]

    pack = 128 // math.gcd(out_dim, 128)       # samples interleaved per packed output row
    align = 128 * pack                         # batch-tile alignment (lanes x pack)
    if tile_b is None:
        tile_b = _pick_tile_b(batch, align)
    assert tile_b % align == 0, "batch tile must be a multiple of 128*pack"

    padded_b = _round_up(batch, tile_b)
    grid = (padded_b // tile_b,)
    tbg = tile_b // pack                       # grouped lane width of one grid step

    f32 = jnp.float32
    eye = jnp.eye(pack, dtype=f32)
    flat = []
    for w, b in params:
        flat.append(jnp.kron(eye, w.astype(f32)))                        # block-diagonal weights
        flat.append(jnp.tile(b.reshape(-1, 1).astype(f32), (pack, 1)))   # (pack*out_i, 1)

    # Pack the input: sample s -> row s//pack, slot s%pack.  Negligible traffic (16 B/sample).
    z_pad = jnp.pad(z.astype(f32), ((0, padded_b - batch), (0, 0)))
    xg = z_pad.reshape(padded_b // pack, pack * latent_dim).T            # (pack*latent, padded_b//pack)

    resident = lambda a: pl.BlockSpec(a.shape, lambda i: (0,) * a.ndim)  # VMEM-resident across steps

    out_packed = pl.pallas_call(
        _make_decoder_kernel(n_layers),
        out_shape=jax.ShapeDtypeStruct((padded_b // pack, pack * out_dim), f32),
        grid=grid,
        in_specs=[pl.BlockSpec((pack * latent_dim, tbg), lambda i: (0, i))]
        + [resident(a) for a in flat],
        out_specs=pl.BlockSpec((tbg, pack * out_dim), lambda i: (i, 0)),
        compiler_params=pltpu.CompilerParams(
            dimension_semantics=("parallel",),   # shard batch tiles across v7x's two TCs
        ),
    )(xg, *flat)

    # Contiguous (row-major) reshape back to (padded_b, out_dim) is free; only the
    # padding tail (if any) costs a small slice copy.
    out = out_packed.reshape(padded_b, out_dim)
    if padded_b != batch:
        out = out[:batch]
    return out


def decoder_reference(z, params):
    h = z
    for i, (w, b) in enumerate(params):
        h = jnp.matmul(h, w.T, precision=jax.lax.Precision.HIGHEST) + b
        if i < len(params) - 1:
            h = jnp.maximum(h, 0.0)
    return h


def init_decoder_params(key, latent_dim, output_dim, hidden_dimensions=(8, 16)):
    """nn.Linear-style init: U(-1/sqrt(fan_in), 1/sqrt(fan_in)); w: (out,in), b: (out,)."""
    dims = [latent_dim] + list(hidden_dimensions) + [output_dim]
    params = []
    for i in range(len(dims) - 1):
        fan_in, fan_out = dims[i], dims[i + 1]
        key, kw, kb = jax.random.split(key, 3)
        bound = 1.0 / math.sqrt(fan_in)
        params.append((
            jax.random.uniform(kw, (fan_out, fan_in), jnp.float32, -bound, bound),
            jax.random.uniform(kb, (fan_out,), jnp.float32, -bound, bound),
        ))
    return params


if __name__ == "__main__":
    latent_dim, output_dim, batch = 4, 32, 2
    key = jax.random.PRNGKey(0)
    key, kz = jax.random.split(key)
    params = init_decoder_params(key, latent_dim, output_dim, hidden_dimensions=[8, 16])
    z = jax.random.normal(kz, (batch, latent_dim), jnp.float32)

    out = jax.block_until_ready(decoder_forward(z, params))
    ref = decoder_reference(z, params)
    assert out.shape == (batch, output_dim)
    assert jnp.allclose(out, ref, atol=1e-4, rtol=1e-4), float(jnp.max(jnp.abs(out - ref)))

    # Multi-step grid (>=2 tiles -> both v7x TensorCores) + ragged batch (tail padding sliced off).
    key, kz2 = jax.random.split(key)
    z2 = jax.random.normal(kz2, (1300, latent_dim), jnp.float32)
    out2 = jax.block_until_ready(decoder_forward(z2, params))
    ref2 = decoder_reference(z2, params)
    assert out2.shape == (1300, output_dim)
    assert jnp.allclose(out2, ref2, atol=1e-4, rtol=1e-4), float(jnp.max(jnp.abs(out2 - ref2)))

    print("KERNEL_OK")
</pallas_src>

<mosaic_0001>
module attributes {stable_mosaic.version = 11 : i64} {
  func.func @kernel(%arg0: i32, %arg1: memref<16x128xf32, #tpu.memory_space<vmem>>, %arg2: memref<32x16xf32, #tpu.memory_space<vmem>>, %arg3: memref<32x1xf32, #tpu.memory_space<vmem>>, %arg4: memref<64x32xf32, #tpu.memory_space<vmem>>, %arg5: memref<64x1xf32, #tpu.memory_space<vmem>>, %arg6: memref<128x64xf32, #tpu.memory_space<vmem>>, %arg7: memref<128x1xf32, #tpu.memory_space<vmem>>, %arg8: memref<128x128xf32, #tpu.memory_space<vmem>>) attributes {dimension_semantics = [#tpu.dimension_semantics<parallel>], iteration_bounds = array<i64: 1>, scalar_prefetch = 0 : i64, scratch_operands = 0 : i64, tpu.core_type = #tpu.core_type<tc>, window_params = [{transform_indices = @transform_0, window_bounds = array<i64: 16, 128>}, {pipeline_mode = #tpu.pipeline_mode<synchronous>, transform_indices = @transform_1, window_bounds = array<i64: 32, 16>}, {pipeline_mode = #tpu.pipeline_mode<synchronous>, transform_indices = @transform_2, window_bounds = array<i64: 32, 1>}, {pipeline_mode = #tpu.pipeline_mode<synchronous>, transform_indices = @transform_3, window_bounds = array<i64: 64, 32>}, {pipeline_mode = #tpu.pipeline_mode<synchronous>, transform_indices = @transform_4, window_bounds = array<i64: 64, 1>}, {pipeline_mode = #tpu.pipeline_mode<synchronous>, transform_indices = @transform_5, window_bounds = array<i64: 128, 64>}, {pipeline_mode = #tpu.pipeline_mode<synchronous>, transform_indices = @transform_6, window_bounds = array<i64: 128, 1>}, {transform_indices = @transform_7, window_bounds = array<i64: 128, 128>}]} {
    %c0 = arith.constant 0 : index
    %c0_0 = arith.constant 0 : index
    %0 = vector.load %arg1[%c0, %c0_0] : memref<16x128xf32, #tpu.memory_space<vmem>>, vector<16x128xf32>
    %c0_1 = arith.constant 0 : index
    %c0_2 = arith.constant 0 : index
    %1 = vector.load %arg2[%c0_1, %c0_2] : memref<32x16xf32, #tpu.memory_space<vmem>>, vector<32x16xf32>
    %c0_3 = arith.constant 0 : index
    %c0_4 = arith.constant 0 : index
    %2 = vector.load %arg3[%c0_3, %c0_4] : memref<32x1xf32, #tpu.memory_space<vmem>>, vector<32x1xf32>
    %cst = arith.constant dense<0.000000e+00> : vector<32x128xf32>
    %3 = tpu.matmul %1, %0, %cst {dimension_numbers = #tpu.dot_dimension_numbers<[1], [0], [0], [1], [0, 0, 1, 1], [], []>} : vector<32x16xf32>, vector<16x128xf32>, vector<32x128xf32> -> vector<32x128xf32>
    %4 = vector.broadcast %2 : vector<32x1xf32> to vector<32x128xf32>
    %5 = arith.addf %3, %4 : vector<32x128xf32>
    %cst_5 = arith.constant 0.000000e+00 : f32
    %6 = vector.broadcast %cst_5 : f32 to vector<32x128xf32>
    %7 = arith.maximumf %5, %6 : vector<32x128xf32>
    %c0_6 = arith.constant 0 : index
    %c0_7 = arith.constant 0 : index
    %8 = vector.load %arg4[%c0_6, %c0_7] : memref<64x32xf32, #tpu.memory_space<vmem>>, vector<64x32xf32>
    %c0_8 = arith.constant 0 : index
    %c0_9 = arith.constant 0 : index
    %9 = vector.load %arg5[%c0_8, %c0_9] : memref<64x1xf32, #tpu.memory_space<vmem>>, vector<64x1xf32>
    %cst_10 = arith.constant dense<0.000000e+00> : vector<64x128xf32>
    %10 = tpu.matmul %8, %7, %cst_10 {dimension_numbers = #tpu.dot_dimension_numbers<[1], [0], [0], [1], [0, 0, 1, 1], [], []>} : vector<64x32xf32>, vector<32x128xf32>, vector<64x128xf32> -> vector<64x128xf32>
    %11 = vector.broadcast %9 : vector<64x1xf32> to vector<64x128xf32>
    %12 = arith.addf %10, %11 : vector<64x128xf32>
    %cst_11 = arith.constant 0.000000e+00 : f32
    %13 = vector.broadcast %cst_11 : f32 to vector<64x128xf32>
    %14 = arith.maximumf %12, %13 : vector<64x128xf32>
    %c0_12 = arith.constant 0 : index
    %c0_13 = arith.constant 0 : index
    %15 = vector.load %arg6[%c0_12, %c0_13] : memref<128x64xf32, #tpu.memory_space<vmem>>, vector<128x64xf32>
    %c0_14 = arith.constant 0 : index
    %c0_15 = arith.constant 0 : index
    %16 = vector.load %arg7[%c0_14, %c0_15] : memref<128x1xf32, #tpu.memory_space<vmem>>, vector<128x1xf32>
    %cst_16 = arith.constant dense<0.000000e+00> : vector<128x128xf32>
    %17 = tpu.matmul %15, %14, %cst_16 {dimension_numbers = #tpu.dot_dimension_numbers<[1], [0], [0], [1], [0, 0, 1, 1], [], []>} : vector<128x64xf32>, vector<64x128xf32>, vector<128x128xf32> -> vector<128x128xf32>
    %18 = vector.broadcast %16 : vector<128x1xf32> to vector<128x128xf32>
    %19 = arith.addf %17, %18 : vector<128x128xf32>
    %20 = tpu.transpose %19, [1, 0] : vector<128x128xf32> -> vector<128x128xf32>
    %c0_17 = arith.constant 0 : index
    %c0_18 = arith.constant 0 : index
    %21 = vector.load %arg8[%c0_17, %c0_18] : memref<128x128xf32, #tpu.memory_space<vmem>>, vector<128x128xf32>
    tpu.vector_store %arg8[%c0_17, %c0_18], %20 {strides = array<i32>} : memref<128x128xf32, #tpu.memory_space<vmem>>, vector<128x128xf32>,
    return
  }
  func.func @transform_0(%arg0: i32) -> (i32, i32) {
    %c0_i32 = arith.constant 0 : i32
    %c0_i32_0 = arith.constant 0 : i32
    return %c0_i32, %arg0 : i32, i32
  }
  func.func @transform_1(%arg0: i32) -> (i32, i32) {
    %c0_i32 = arith.constant 0 : i32
    %c0_i32_0 = arith.constant 0 : i32
    %c0_i32_1 = arith.constant 0 : i32
    return %c0_i32, %c0_i32_0 : i32, i32
  }
  func.func @transform_2(%arg0: i32) -> (i32, i32) {
    %c0_i32 = arith.constant 0 : i32
    %c0_i32_0 = arith.constant 0 : i32
    %c0_i32_1 = arith.constant 0 : i32
    return %c0_i32, %c0_i32_0 : i32, i32
  }
  func.func @transform_3(%arg0: i32) -> (i32, i32) {
    %c0_i32 = arith.constant 0 : i32
    %c0_i32_0 = arith.constant 0 : i32
    %c0_i32_1 = arith.constant 0 : i32
    return %c0_i32, %c0_i32_0 : i32, i32
  }
  func.func @transform_4(%arg0: i32) -> (i32, i32) {
    %c0_i32 = arith.constant 0 : i32
    %c0_i32_0 = arith.constant 0 : i32
    %c0_i32_1 = arith.constant 0 : i32
    return %c0_i32, %c0_i32_0 : i32, i32
  }
  func.func @transform_5(%arg0: i32) -> (i32, i32) {
    %c0_i32 = arith.constant 0 : i32
    %c0_i32_0 = arith.constant 0 : i32
    %c0_i32_1 = arith.constant 0 : i32
    return %c0_i32, %c0_i32_0 : i32, i32
  }
  func.func @transform_6(%arg0: i32) -> (i32, i32) {
    %c0_i32 = arith.constant 0 : i32
    %c0_i32_0 = arith.constant 0 : i32
    %c0_i32_1 = arith.constant 0 : i32
    return %c0_i32, %c0_i32_0 : i32, i32
  }
  func.func @transform_7(%arg0: i32) -> (i32, i32) {
    %c0_i32 = arith.constant 0 : i32
    %c0_i32_0 = arith.constant 0 : i32
    return %arg0, %c0_i32 : i32, i32
  }
}

</mosaic_0001>

<bundles_post_ra>
// kernel: decoder_forward.1
= control target key start
LH: loop header
LB: loop body
LE: loop exit
PB: predicated region body
PF: predicated region fallthrough
CT: control target
= control target key end

     0   :  { %vm56_vm0 = vcmask 130048   ;;  %v869_v3 = vmov 0   ;;  %vm214_vm1 = vcmask 261120   ;;  %vm464_vm2 = vcmask 523264   ;;  %s1160_s0 = inlined_call_operand.vmem [shape: f32[16,128], index: 0, kind: input, shape index: {}]   ;;  %s1161_s1 = inlined_call_operand.vmem [shape: f32[32,16], index: 1, kind: input, shape index: {}]   ;;  %s1162_s2 = inlined_call_operand.vmem [shape: f32[32,1], index: 2, kind: input, shape index: {}]   ;;  %s1163_s4 = inlined_call_operand.vmem [shape: f32[64,1], index: 4, kind: input, shape index: {}]   ;;  %s1164_s6 = inlined_call_operand.vmem [shape: f32[128,1], index: 6, kind: input, shape index: {}]   ;;  %s1165_s3 = inlined_call_operand.vmem [shape: f32[64,32], index: 3, kind: input, shape index: {}]   ;;  %s1166_s5 = inlined_call_operand.vmem [shape: f32[128,64], index: 5, kind: input, shape index: {}]   ;;  %s1167_s7 = inlined_call_operand.vmem [shape: f32[128,128], index: 7, kind: output, shape index: {}]  }
   0x1   :  { %v27_v0 = vld [vmem:[%s1160_s0 + $0x8] sm:$0xff]  ;;  %v26_v1 = vld [vmem:[%s1160_s0] sm:$0xff]  ;;  %867 = vset.pattern.permute.xlu0 %v869_v3  ;;  %868 = vset.pattern.permute.xlu1 %v869_v3  ;;  %v35_v5 = vld [vmem:[%s1162_s2 + $0x18] sm:$0xff] }
   0x2   :  { %v28_v2 = vld [vmem:[%s1161_s1] sm:$0xff]  ;;  %780 = vmatprep.subr.mxu0 %v27_v0  ;;  %v29_v4 = vld [vmem:[%s1161_s1 + $0x8] sm:$0xff]  ;;  %v30_v7 = vld [vmem:[%s1161_s1 + $0x10] sm:$0xff]  ;;  %53 = vperm.xlu0 %867, %v35_v5  }
   0x3   :  { %784 = vmatprep.mubr.msk.f32.mxu0 %vm56_vm0, %v28_v2  ;;  %781 = vmatpush3.msra.mxu0 %v27_v0  ;;  %v33_v6 = vld [vmem:[%s1162_s2 + $0x8] sm:$0xff]  ;;  %v34_v8 = vld [vmem:[%s1162_s2 + $0x10] sm:$0xff]  ;;  %v32_v9 = vld [vmem:[%s1162_s2] sm:$0xff] }
   0x4   :  { %782 = vmatprep.subr.mxu0 %v26_v1  ;;  %43 = vperm.xlu1 %868, %v33_v6   ;;  %v31_v10 = vld [vmem:[%s1161_s1 + $0x18] sm:$0xff]  ;;  %v172_v12 = vld [vmem:[%s1163_s4 + $0x30] sm:$0xff]  ;;  %v171_v13 = vld [vmem:[%s1163_s4 + $0x28] sm:$0xff] }
   0x5   :  { %783 = vmatpush3.msra.mxu0 %v26_v1  ;;  %v173_v11 = vld [vmem:[%s1163_s4 + $0x38] sm:$0xff]  ;;  %v170_v14 = vld [vmem:[%s1163_s4 + $0x20] sm:$0xff]  ;;  %v168_v16 = vld [vmem:[%s1163_s4 + $0x10] sm:$0xff] }
   0x6   :  { %785 = vmatmul.mubr.msk.f32.vlgmr.msra.gmra.mxu0 %vm56_vm0, %v29_v4  ;;  %48 = vperm.xlu0 %867, %v34_v8   ;;  %v169_v15 = vld [vmem:[%s1163_s4 + $0x18] sm:$0xff]  ;;  %v167_v17 = vld [vmem:[%s1163_s4 + $0x8] sm:$0xff]  ;;  %v166_v18 = vld [vmem:[%s1163_s4] sm:$0xff] }
   0x7   :  { %787 = vmatprep.mubr.msk.f32.mxu0 %vm56_vm0, %v30_v7  ;;  %v368_v19 = vld [vmem:[%s1164_s6] sm:$0xff]  ;;  %v369_v20 = vld [vmem:[%s1164_s6 + $0x8] sm:$0xff]  ;;  %v370_v21 = vld [vmem:[%s1164_s6 + $0x10] sm:$0xff] }
   0x8   :  { %38 = vperm.xlu1 %868, %v32_v9   ;;  %v371_v22 = vld [vmem:[%s1164_s6 + $0x18] sm:$0xff]  ;;  %v372_v23 = vld [vmem:[%s1164_s6 + $0x20] sm:$0xff]  ;;  %v373_v24 = vld [vmem:[%s1164_s6 + $0x28] sm:$0xff] }
   0x9   :  { %v374_v25 = vld [vmem:[%s1164_s6 + $0x30] sm:$0xff]  ;;  %v375_v26 = vld [vmem:[%s1164_s6 + $0x38] sm:$0xff]  ;;  %v376_v27 = vld [vmem:[%s1164_s6 + $0x40] sm:$0xff] }
   0xa   :  { %788 = vmatmul.mubr.msk.f32.gmra.mxu0 %vm56_vm0, %v31_v10  ;;  %211 = vperm.xlu0 %867, %v173_v11   ;;  %v377_v28 = vld [vmem:[%s1164_s6 + $0x48] sm:$0xff]  ;;  %v378_v29 = vld [vmem:[%s1164_s6 + $0x50] sm:$0xff]  ;;  %v379_v30 = vld [vmem:[%s1164_s6 + $0x58] sm:$0xff] }
   0xb   :  { %v380_v31 = vld [vmem:[%s1164_s6 + $0x60] sm:$0xff]  ;;  %v381_v32 = vld [vmem:[%s1164_s6 + $0x68] sm:$0xff]  ;;  %v382_v33 = vld [vmem:[%s1164_s6 + $0x70] sm:$0xff] }
   0xc   :  { %206 = vperm.xlu1 %868, %v172_v12   ;;  %v383_v34 = vld [vmem:[%s1164_s6 + $0x78] sm:$0xff]  ;;  %v158_v35 = vld [vmem:[%s1165_s3] sm:$0xff]  ;;  %v159_v52 = vld [vmem:[%s1165_s3 + $0x8] sm:$0xff] }
   0xd   :  { %798 = vmatprep.mubr.msk.f32.mxu1 %vm214_vm1, %v158_v35  ;;  %v160_v53 = vld [vmem:[%s1165_s3 + $0x10] sm:$0xff]  ;;  %v161_v54 = vld [vmem:[%s1165_s3 + $0x18] sm:$0xff]  ;;  %v162_v55 = vld [vmem:[%s1165_s3 + $0x20] sm:$0xff] }
   0xe   :  { %201 = vperm.xlu0 %867, %v171_v13   ;;  %v163_v56 = vld [vmem:[%s1165_s3 + $0x28] sm:$0xff]  ;;  %v164_v57 = vld [vmem:[%s1165_s3 + $0x30] sm:$0xff]  ;;  %v165_v58 = vld [vmem:[%s1165_s3 + $0x38] sm:$0xff] }
   0xf   :  { %v352_v59 = vld [vmem:[%s1166_s5] sm:$0xff]  ;;  %v362_v60 = vld [vmem:[%s1166_s5 + $0x50] sm:$0xff] }
  0x10   :  { %196 = vperm.xlu1 %868, %v170_v14   ;;  %826 = vmatprep.mubr.msk.f32.mxu0 %vm464_vm2, %v352_v59  ;;  %v356_v35 = vld [vmem:[%s1166_s5 + $0x20] sm:$0xff] }
  0x12   :  { %191 = vperm.xlu0 %867, %v169_v15  }
  0x14   :  { %186 = vperm.xlu1 %868, %v168_v16  }
  0x16   :  { %181 = vperm.xlu0 %867, %v167_v17  }
  0x18   :  { %176 = vperm.xlu1 %868, %v166_v18  }
  0x1a   :  { %386 = vperm.xlu0 %867, %v368_v19  }
  0x1c   :  { %391 = vperm.xlu1 %868, %v369_v20  }
  0x1e   :  { %396 = vperm.xlu0 %867, %v370_v21  }
  0x20   :  { %401 = vperm.xlu1 %868, %v371_v22  }
  0x22   :  { %406 = vperm.xlu0 %867, %v372_v23  }
  0x24   :  { %411 = vperm.xlu1 %868, %v373_v24  }
  0x26   :  { %416 = vperm.xlu0 %867, %v374_v25  }
  0x28   :  { %421 = vperm.xlu1 %868, %v375_v26  }
  0x2a   :  { %426 = vperm.xlu0 %867, %v376_v27  }
  0x2c   :  { %431 = vperm.xlu1 %868, %v377_v28  }
  0x2e   :  { %436 = vperm.xlu0 %867, %v378_v29   ;;  %v353_v29 = vld [vmem:[%s1166_s5 + $0x8] sm:$0xff] }
  0x30   :  { %441 = vperm.xlu1 %868, %v379_v30   ;;  %v363_v30 = vld [vmem:[%s1166_s5 + $0x58] sm:$0xff] }
  0x32   :  { %446 = vperm.xlu0 %867, %v380_v31   ;;  %v354_v31 = vld [vmem:[%s1166_s5 + $0x10] sm:$0xff] }
  0x34   :  { %451 = vperm.xlu1 %868, %v381_v32   ;;  %v364_v32 = vld [vmem:[%s1166_s5 + $0x60] sm:$0xff] }
  0x36   :  { %456 = vperm.xlu0 %867, %v382_v33   ;;  %v355_v33 = vld [vmem:[%s1166_s5 + $0x18] sm:$0xff] }
  0x38   :  { %461 = vperm.xlu1 %868, %v383_v34   ;;  %v365_v34 = vld [vmem:[%s1166_s5 + $0x68] sm:$0xff] }
  0x7d   :  { %v54_v36 = vpop.permute.xlu0 %53 }
  0x7f   :  { %v44_v38 = vpop.permute.xlu1 %43 }
  0x81   :  { %v49_v42 = vpop.permute.xlu0 %48 }
  0x83   :  { %v39_v47 = vpop.permute.xlu1 %38 }
  0x85   :  { %v212_v63 = vpop.permute.xlu0 %211 }
  0x87   :  { %v207_v1 = vpop.permute.xlu1 %206 }
  0x89   :  { %v202_v4 = vpop.permute.xlu0 %201 }
  0x8b   :  { %v197_v6 = vpop.permute.xlu1 %196 }
  0x8d   :  { %v192_v13 = vpop.permute.xlu0 %191 }
  0x8f   :  { %v187_v16 = vpop.permute.xlu1 %186 }
  0x91   :  { %v182_v21 = vpop.permute.xlu0 %181 }
  0x93   :  { %v177_v24 = vpop.permute.xlu1 %176 }
  0xc6   :  { %v786_v37 = vpop.f32.mrf.mxu0 }
  0xc7   :  { %v141_v44 = vadd.f32 %v786_v37, %v44_v38  ;;  %v357_v37 = vld [vmem:[%s1166_s5 + $0x28] sm:$0xff]  ;;  %v367_v38 = vld [vmem:[%s1166_s5 + $0x78] sm:$0xff] }
  0xc8   :  { %v135_v39 = vpop.f32.mrf.mxu0 }
  0xc9   :  { %v136_v48 = vadd.f32 %v135_v39, %v39_v47  ;;  %v155_v50 = vmax.f32 %v141_v44, 0.0  ;;  %v358_v39 = vld [vmem:[%s1166_s5 + $0x30] sm:$0xff]  ;;  %v387_v44 = vpop.permute.xlu0 %386 }
  0xca   :  { %v789_v40 = vpop.f32.mrf.mxu0 }
  0xcb   :  { %v151_v41 = vadd.f32 %v789_v40, %v54_v36  ;;  %v154_v51 = vmax.f32 %v136_v48, 0.0  ;;  %v366_v36 = vld [vmem:[%s1166_s5 + $0x70] sm:$0xff]  ;;  %v359_v40 = vld [vmem:[%s1166_s5 + $0x38] sm:$0xff]  ;;  %v392_v48 = vpop.permute.xlu1 %391 }
  0xcc   :  { %v145_v43 = vpop.f32.mrf.mxu0 }
  0xcd   :  { %v157_v45 = vmax.f32 %v151_v41, 0.0  ;;  %v146_v46 = vadd.f32 %v145_v43, %v49_v42  ;;  %v360_v41 = vld [vmem:[%s1166_s5 + $0x40] sm:$0xff]  ;;  %v361_v42 = vld [vmem:[%s1166_s5 + $0x48] sm:$0xff] }
  0xcf   :  { %v156_v49 = vmax.f32 %v146_v46, 0.0  ;;  %790 = vmatprep.subr.mxu1 %v157_v45 }
  0xd0   :  { %791 = vmatpush3.msra.mxu1 %v157_v45 }
  0xd1   :  { %792 = vmatprep.subr.mxu1 %v156_v49 }
  0xd2   :  { %793 = vmatpush3.msra.mxu1 %v156_v49 }
  0xd3   :  { %794 = vmatprep.subr.mxu1 %v155_v50 }
  0xd4   :  { %795 = vmatpush3.msra.mxu1 %v155_v50 }
  0xd5   :  { %796 = vmatprep.subr.mxu1 %v154_v51 }
  0xd6   :  { %797 = vmatpush3.msra.mxu1 %v154_v51  ;;  %v397_v51 = vpop.permute.xlu0 %396 }
  0xd7   :  { %799 = vmatmul.mubr.msk.f32.vlgmr.msra.gmra.mxu1 %vm214_vm1, %v159_v52 }
  0xd8   :  { %801 = vmatprep.mubr.msk.f32.mxu1 %vm214_vm1, %v160_v53 }
  0xdb   :  { %802 = vmatmul.mubr.msk.f32.gmra.mxu1 %vm214_vm1, %v161_v54  ;;  %v402_v54 = vpop.permute.xlu1 %401 }
  0xdc   :  { %804 = vmatprep.mubr.msk.f32.mxu1 %vm214_vm1, %v162_v55 }
  0xdf   :  { %805 = vmatmul.mubr.msk.f32.gmra.mxu1 %vm214_vm1, %v163_v56 }
  0xe0   :  { %807 = vmatprep.mubr.msk.f32.mxu1 %vm214_vm1, %v164_v57  ;;  %v407_v57 = vpop.permute.xlu0 %406 }
  0xe3   :  { %808 = vmatmul.mubr.msk.f32.gmra.mxu1 %vm214_vm1, %v165_v58 }
  0xe4   :  { %841 = vmatprep.mubr.msk.f32.mxu1 %vm464_vm2, %v362_v60  ;;  %v412_v60 = vpop.permute.xlu1 %411 }
 0x197   :  { %v800_v61 = vpop.f32.mrf.mxu1 }
 0x198   :  { %v311_v22 = vadd.f32 %v800_v61, %v182_v21 }
 0x199   :  { %v305_v62 = vpop.f32.mrf.mxu1 }
 0x19a   :  { %v306_v25 = vadd.f32 %v305_v62, %v177_v24  ;;  %v345_v27 = vmax.f32 %v311_v22, 0.0 }
 0x19b   :  { %v803_v0 = vpop.f32.mrf.mxu1 }
 0x19c   :  { %v321_v17 = vadd.f32 %v803_v0, %v192_v13  ;;  %v344_v28 = vmax.f32 %v306_v25, 0.0 }
 0x19d   :  { %v315_v2 = vpop.f32.mrf.mxu1 }
 0x19e   :  { %v316_v19 = vadd.f32 %v315_v2, %v187_v16  ;;  %v347_v23 = vmax.f32 %v321_v17, 0.0  ;;  %v422_v2 = vpop.permute.xlu1 %421 }
 0x19f   :  { %v806_v3 = vpop.f32.mrf.mxu1 }
 0x1a0   :  { %v331_v10 = vadd.f32 %v806_v3, %v202_v4  ;;  %v346_v26 = vmax.f32 %v316_v19, 0.0 }
 0x1a1   :  { %v325_v5 = vpop.f32.mrf.mxu1 }
 0x1a2   :  { %v326_v14 = vadd.f32 %v325_v5, %v197_v6  ;;  %v349_v18 = vmax.f32 %v331_v10, 0.0 }
 0x1a3   :  { %v809_v7 = vpop.f32.mrf.mxu1 }
 0x1a4   :  { %v341_v8 = vadd.f32 %v809_v7, %v212_v63  ;;  %v348_v20 = vmax.f32 %v326_v14, 0.0  ;;  %v417_v63 = vpop.permute.xlu0 %416 }
 0x1a5   :  { %v335_v9 = vpop.f32.mrf.mxu1 }
 0x1a6   :  { %v351_v11 = vmax.f32 %v341_v8, 0.0  ;;  %v336_v12 = vadd.f32 %v335_v9, %v207_v1  ;;  %v432_v8 = vpop.permute.xlu1 %431 }
 0x1a8   :  { %v350_v15 = vmax.f32 %v336_v12, 0.0  ;;  %810 = vmatprep.subr.mxu0 %v351_v11  ;;  %850 = vmatprep.subr.mxu1 %v351_v11  ;;  %v427_v5 = vpop.permute.xlu0 %426 }
 0x1a9   :  { %811 = vmatpush3.msra.mxu0 %v351_v11  ;;  %858 = vmatpush3.msra.mxu1 %v351_v11 }
 0x1aa   :  { %812 = vmatprep.subr.mxu0 %v350_v15  ;;  %851 = vmatprep.subr.mxu1 %v350_v15  ;;  %v442_v14 = vpop.permute.xlu1 %441 }
 0x1ab   :  { %813 = vmatpush3.msra.mxu0 %v350_v15  ;;  %859 = vmatpush3.msra.mxu1 %v350_v15 }
 0x1ac   :  { %814 = vmatprep.subr.mxu0 %v349_v18  ;;  %852 = vmatprep.subr.mxu1 %v349_v18  ;;  %v437_v11 = vpop.permute.xlu0 %436 }
 0x1ad   :  { %815 = vmatpush3.msra.mxu0 %v349_v18  ;;  %860 = vmatpush3.msra.mxu1 %v349_v18 }
 0x1ae   :  { %816 = vmatprep.subr.mxu0 %v348_v20  ;;  %853 = vmatprep.subr.mxu1 %v348_v20 }
 0x1af   :  { %817 = vmatpush3.msra.mxu0 %v348_v20  ;;  %861 = vmatpush3.msra.mxu1 %v348_v20  ;;  %v452_v20 = vpop.permute.xlu1 %451 }
 0x1b0   :  { %818 = vmatprep.subr.mxu0 %v347_v23  ;;  %854 = vmatprep.subr.mxu1 %v347_v23  ;;  %v447_v17 = vpop.permute.xlu0 %446 }
 0x1b1   :  { %819 = vmatpush3.msra.mxu0 %v347_v23  ;;  %862 = vmatpush3.msra.mxu1 %v347_v23 }
 0x1b2   :  { %820 = vmatprep.subr.mxu0 %v346_v26  ;;  %855 = vmatprep.subr.mxu1 %v346_v26 }
 0x1b3   :  { %821 = vmatpush3.msra.mxu0 %v346_v26  ;;  %863 = vmatpush3.msra.mxu1 %v346_v26  ;;  %v462_v25 = vpop.permute.xlu1 %461 }
 0x1b4   :  { %822 = vmatprep.subr.mxu0 %v345_v27  ;;  %856 = vmatprep.subr.mxu1 %v345_v27  ;;  %v457_v23 = vpop.permute.xlu0 %456 }
 0x1b5   :  { %823 = vmatpush3.msra.mxu0 %v345_v27  ;;  %864 = vmatpush3.msra.mxu1 %v345_v27 }
 0x1b6   :  { %824 = vmatprep.subr.mxu0 %v344_v28  ;;  %857 = vmatprep.subr.mxu1 %v344_v28 }
 0x1b7   :  { %825 = vmatpush3.msra.mxu0 %v344_v28  ;;  %865 = vmatpush3.msra.mxu1 %v344_v28 }
 0x1b8   :  { %827 = vmatmul.mubr.msk.f32.vlgmr.msra.gmra.mxu0 %vm464_vm2, %v353_v29  ;;  %842 = vmatmul.mubr.msk.f32.vlgmr.msra.gmra.mxu1 %vm464_vm2, %v363_v30 }
 0x1b9   :  { %829 = vmatprep.mubr.msk.f32.mxu0 %vm464_vm2, %v354_v31  ;;  %844 = vmatprep.mubr.msk.f32.mxu1 %vm464_vm2, %v364_v32 }
 0x1bc   :  { %830 = vmatmul.mubr.msk.f32.gmra.mxu0 %vm464_vm2, %v355_v33  ;;  %845 = vmatmul.mubr.msk.f32.gmra.mxu1 %vm464_vm2, %v365_v34 }
 0x1bd   :  { %832 = vmatprep.mubr.msk.f32.mxu0 %vm464_vm2, %v356_v35  ;;  %847 = vmatprep.mubr.msk.f32.mxu1 %vm464_vm2, %v366_v36 }
 0x1c0   :  { %833 = vmatmul.mubr.msk.f32.gmra.mxu0 %vm464_vm2, %v357_v37  ;;  %848 = vmatmul.mubr.msk.f32.gmra.mxu1 %vm464_vm2, %v367_v38 }
 0x1c1   :  { %835 = vmatprep.mubr.msk.f32.mxu0 %vm464_vm2, %v358_v39 }
 0x1c4   :  { %836 = vmatmul.mubr.msk.f32.gmra.mxu0 %vm464_vm2, %v359_v40 }
 0x1c5   :  { %838 = vmatprep.mubr.msk.f32.mxu0 %vm464_vm2, %v360_v41 }
 0x1c8   :  { %839 = vmatmul.mubr.msk.f32.gmra.mxu0 %vm464_vm2, %v361_v42 }
 0x278   :  { %v828_v43 = vpop.f32.mrf.mxu0  ;;  %v843_v7 = vpop.f32.mrf.mxu1 }
 0x279   :  { %v585_v49 = vadd.f32 %v828_v43, %v392_v48  ;;  %v635_v15 = vadd.f32 %v843_v7, %v442_v14 }
 0x27a   :  { %v579_v45 = vpop.f32.mrf.mxu0  ;;  %v629_v10 = vpop.f32.mrf.mxu1 }
 0x27b   :  { %v580_v46 = vadd.f32 %v579_v45, %v387_v44  ;;  %v630_v12 = vadd.f32 %v629_v10, %v437_v11 }
 0x27c   :  { %v831_v47 = vpop.f32.mrf.mxu0  ;;  %v846_v13 = vpop.f32.mrf.mxu1 }
 0x27d   :  { %658 = vxpose.xlu0.b32.start [1/16] %v580_v46, 128  ;;  %v595_v55 = vadd.f32 %v831_v47, %v402_v54  ;;  %v645_v21 = vadd.f32 %v846_v13, %v452_v20 }
 0x27e   :  { %v589_v50 = vpop.f32.mrf.mxu0  ;;  %v639_v16 = vpop.f32.mrf.mxu1 }
 0x27f   :  { %v590_v52 = vadd.f32 %v589_v50, %v397_v51  ;;  %v640_v18 = vadd.f32 %v639_v16, %v447_v17 }
 0x280   :  { %v834_v53 = vpop.f32.mrf.mxu0  ;;  %v849_v19 = vpop.f32.mrf.mxu1 }
 0x281   :  { %659 = vxpose.xlu0.b32.cont [2/16] %v585_v49, 128  ;;  %v605_v61 = vadd.f32 %v834_v53, %v412_v60  ;;  %v655_v26 = vadd.f32 %v849_v19, %v462_v25 }
 0x282   :  { %v599_v56 = vpop.f32.mrf.mxu0  ;;  %v649_v22 = vpop.f32.mrf.mxu1 }
 0x283   :  { %v600_v58 = vadd.f32 %v599_v56, %v407_v57  ;;  %v650_v24 = vadd.f32 %v649_v22, %v457_v23 }
 0x284   :  { %v837_v59 = vpop.f32.mrf.mxu0 }
 0x285   :  { %660 = vxpose.xlu0.b32.cont [3/16] %v590_v52, 128  ;;  %v615_v3 = vadd.f32 %v837_v59, %v422_v2 }
 0x286   :  { %v609_v62 = vpop.f32.mrf.mxu0 }
 0x287   :  { %v610_v0 = vadd.f32 %v609_v62, %v417_v63 }
 0x288   :  { %v840_v1 = vpop.f32.mrf.mxu0 }
 0x289   :  { %661 = vxpose.xlu0.b32.cont [4/16] %v595_v55, 128  ;;  %v625_v9 = vadd.f32 %v840_v1, %v432_v8 }
 0x28a   :  { %v619_v4 = vpop.f32.mrf.mxu0 }
 0x28b   :  { %v620_v6 = vadd.f32 %v619_v4, %v427_v5 }
 0x28d   :  { %662 = vxpose.xlu0.b32.cont [5/16] %v600_v58, 128 }
 0x291   :  { %663 = vxpose.xlu0.b32.cont [6/16] %v605_v61, 128 }
 0x295   :  { %664 = vxpose.xlu0.b32.cont [7/16] %v610_v0, 128 }
 0x299   :  { %665 = vxpose.xlu0.b32.cont [8/16] %v615_v3, 128 }
 0x29d   :  { %666 = vxpose.xlu0.b32.cont [9/16] %v620_v6, 128 }
 0x2a1   :  { %667 = vxpose.xlu0.b32.cont [10/16] %v625_v9, 128 }
 0x2a5   :  { %668 = vxpose.xlu0.b32.cont [11/16] %v630_v12, 128 }
 0x2a9   :  { %669 = vxpose.xlu0.b32.cont [12/16] %v635_v15, 128 }
 0x2ad   :  { %670 = vxpose.xlu0.b32.cont [13/16] %v640_v18, 128 }
 0x2b1   :  { %671 = vxpose.xlu0.b32.cont [14/16] %v645_v21, 128 }
 0x2b5   :  { %672 = vxpose.xlu0.b32.cont [15/16] %v650_v24, 128 }
 0x2b9   :  { %673 = vxpose.xlu0.b32.end [16/16] %v655_v26, 128 }
 0x2f9   :  { %v674_v27 = vpop.trf.xlu0 }
 0x2fa   :  { %690 = vst [vmem:[%s1167_s7] sm:$0xff] %v674_v27 }
 0x2fd   :  { %v675_v28 = vpop.trf.xlu0 }
 0x2fe   :  { %691 = vst [vmem:[%s1167_s7 + $0x8] sm:$0xff] %v675_v28 }
 0x301   :  { %v676_v29 = vpop.trf.xlu0 }
 0x302   :  { %692 = vst [vmem:[%s1167_s7 + $0x10] sm:$0xff] %v676_v29 }
 0x305   :  { %v677_v30 = vpop.trf.xlu0 }
 0x306   :  { %693 = vst [vmem:[%s1167_s7 + $0x18] sm:$0xff] %v677_v30 }
 0x309   :  { %v678_v31 = vpop.trf.xlu0 }
 0x30a   :  { %694 = vst [vmem:[%s1167_s7 + $0x20] sm:$0xff] %v678_v31 }
 0x30d   :  { %v679_v32 = vpop.trf.xlu0 }
 0x30e   :  { %695 = vst [vmem:[%s1167_s7 + $0x28] sm:$0xff] %v679_v32 }
 0x311   :  { %v680_v33 = vpop.trf.xlu0 }
 0x312   :  { %696 = vst [vmem:[%s1167_s7 + $0x30] sm:$0xff] %v680_v33 }
 0x315   :  { %v681_v34 = vpop.trf.xlu0 }
 0x316   :  { %697 = vst [vmem:[%s1167_s7 + $0x38] sm:$0xff] %v681_v34 }
 0x319   :  { %v682_v35 = vpop.trf.xlu0 }
 0x31a   :  { %698 = vst [vmem:[%s1167_s7 + $0x40] sm:$0xff] %v682_v35 }
 0x31d   :  { %v683_v36 = vpop.trf.xlu0 }
 0x31e   :  { %699 = vst [vmem:[%s1167_s7 + $0x48] sm:$0xff] %v683_v36 }
 0x321   :  { %v684_v37 = vpop.trf.xlu0 }
 0x322   :  { %700 = vst [vmem:[%s1167_s7 + $0x50] sm:$0xff] %v684_v37 }
 0x325   :  { %v685_v38 = vpop.trf.xlu0 }
 0x326   :  { %701 = vst [vmem:[%s1167_s7 + $0x58] sm:$0xff] %v685_v38 }
 0x329   :  { %v686_v39 = vpop.trf.xlu0 }
 0x32a   :  { %702 = vst [vmem:[%s1167_s7 + $0x60] sm:$0xff] %v686_v39 }
 0x32d   :  { %v687_v40 = vpop.trf.xlu0 }
 0x32e   :  { %703 = vst [vmem:[%s1167_s7 + $0x68] sm:$0xff] %v687_v40 }
 0x331   :  { %v688_v41 = vpop.trf.xlu0 }
 0x332   :  { %704 = vst [vmem:[%s1167_s7 + $0x70] sm:$0xff] %v688_v41 }
 0x335   :  { %v689_v42 = vpop.trf.xlu0 }
 0x336   :  { %705 = vst [vmem:[%s1167_s7 + $0x78] sm:$0xff] %v689_v42 }

</bundles_post_ra>
